<compile_context>
chip_gen: v7x
topology: tpu7x:2x2x1
jax: 0.10.0
libtpu: 0.0.40
codegen_flags: <defaults>
</compile_context>

<pallas_src>
import jax
import jax.numpy as jnp
from jax import lax
from jax.experimental import pallas as pl
from jax.experimental.pallas import tpu as pltpu


def _round_up(n, m):
    return ((n + m - 1) // m) * m


# -----------------------------------------------------------------------------
# Fused linear: y = x @ w + b   (x: (M, K), w: (K, N), b: (1, N))
# -----------------------------------------------------------------------------
def _linear_kernel(x_ref, w_ref, b_ref, o_ref):
    acc = jnp.dot(x_ref[...].astype(w_ref.dtype), w_ref[...],
                  preferred_element_type=jnp.float32)
    o_ref[...] = (acc + b_ref[...]).astype(o_ref.dtype)


def _pallas_linear(x2d, w_t, b_row, *, tile_m=512):
    M, K = x2d.shape
    N = w_t.shape[1]
    tm = min(tile_m, _round_up(M, 8))
    Mp = _round_up(M, tm)
    if Mp != M:
        x2d = jnp.pad(x2d, ((0, Mp - M), (0, 0)))

    # Explicit scoped-VMEM budget derived from the block sizes (double-buffered
    # x/out tiles + weights/bias), clamped to stay within v7x's 64 MiB physical.
    need = (2 * tm * K * x2d.dtype.itemsize
            + 2 * tm * N * 4
            + 2 * K * N * w_t.dtype.itemsize
            + 2 * N * 4)
    vmem_limit = int(min(max(2 * need, 32 << 20), 64 << 20))

    y = pl.pallas_call(
        _linear_kernel,
        out_shape=jax.ShapeDtypeStruct((Mp, N), jnp.float32),
        grid_spec=pltpu.PrefetchScalarGridSpec(
            num_scalar_prefetch=0,
            grid=(Mp // tm,),
            in_specs=[
                pl.BlockSpec((tm, K), lambda i: (i, 0)),   # x row-tile
                pl.BlockSpec((K, N), lambda i: (0, 0)),    # weight (resident)
                pl.BlockSpec((1, N), lambda i: (0, 0)),    # bias
            ],
            out_specs=pl.BlockSpec((tm, N), lambda i: (i, 0)),
        ),
        compiler_params=pltpu.CompilerParams(
            dimension_semantics=("parallel",),
            vmem_limit_bytes=vmem_limit),
    )(x2d, w_t, b_row)
    return y[:M]


# -----------------------------------------------------------------------------
# Recurrence + fused output projection:
#   h_t   = tanh(xW_t + h_{t-1} @ W_hh^T)
#   out_t = h_t @ W_out^T + b_out          (one block GEMM per t_blk timesteps)
# -----------------------------------------------------------------------------
def _make_rnn_kernel(t_blk, seq_len, compute_dtype):
    def kernel(xw_ref, whh_ref, wout_ref, bout_ref,
               out_ref, hfinal_ref, h_scratch, hblk_scratch):
        tb = pl.program_id(1)            # time-block index (inner, "arbitrary")

        @pl.when(tb == 0)
        def _():
            # PyTorch default: hidden starts as zeros (per batch tile).
            h_scratch[...] = jnp.zeros_like(h_scratch)

        # W_hh^T stays resident across all t_blk steps of this grid iteration.
        # TODO(synk): for Hp >= 256 keep the RHS stationary in the MXU via
        # pltpu.matmul_push_rhs/matmul_acc_lhs/matmul_pop instead of holding it
        # as a value (a (256,256) f32 value is the whole register file).
        whh = whh_ref[...]
        base_t = tb * t_blk

        def step(i, h):
            pre = xw_ref[i] + jnp.dot(h.astype(compute_dtype), whh,
                                      preferred_element_type=jnp.float32)
            h_new = jnp.tanh(pre)
            hblk_scratch[i] = h_new

            # Capture the hidden state of the last *valid* timestep.  Padded
            # tail timesteps (t >= seq_len) may compute garbage that the
            # wrapper slices off, so no per-step tail mask is needed.
            @pl.when(base_t + i == seq_len - 1)
            def _():
                hfinal_ref[...] = h_new.astype(hfinal_ref.dtype)

            return h_new

        h = lax.fori_loop(0, t_blk, step, h_scratch[...], unroll=True)
        h_scratch[...] = h

        # Fused, lane-dense output projection for the whole time block: one
        # (t_blk*Bt, Hp) x (Hp, Op) GEMM -- no hiddens HBM round trip.
        bt, hp = h_scratch.shape
        hb = hblk_scratch[...].reshape(t_blk * bt, hp)
        out = (jnp.dot(hb.astype(wout_ref.dtype), wout_ref[...],
                       preferred_element_type=jnp.float32)
               + bout_ref[...])
        out_ref[...] = out.reshape(out_ref.shape).astype(out_ref.dtype)

    return kernel


def minimal_rnn_forward(x, w_xh, b_xh, w_hh, b_hh, w_out, b_out, *,
                        t_blk=32, param_dtype=jnp.float32):
    """MinimalRNN forward.  x: (S, B, I); weights in torch Linear (out, in) layout."""
    S, B, I = x.shape
    H = w_hh.shape[0]
    O = w_out.shape[0]

    f32 = jnp.float32
    t_blk = max(1, min(t_blk, S))      # don't over-pad tiny sequences
    Bp = _round_up(B, 8)               # f32 sublane tile
    Hp = _round_up(H, 128)             # lane tile (hidden)
    Op = _round_up(O, 128)             # lane-dense output (no masked vst)
    Sp = _round_up(S, t_blk)

    # Megacore-friendly batch tiling: two batch tiles when the padded batch
    # allows it, so v7x's two TensorCores each take one (leading "parallel" axis).
    b_tile = Bp // 2 if (Bp >= 16 and Bp % 16 == 0) else Bp

    # Pre-transpose + zero-pad weights to (8,128)-aligned, lane-dense shapes;
    # fold the two hidden biases (always summed).  Zero padding is exact here.
    wd = param_dtype
    wxh_t = jnp.zeros((I, Hp), wd).at[:, :H].set(w_xh.T.astype(wd))
    whh_t = jnp.zeros((Hp, Hp), wd).at[:H, :H].set(w_hh.T.astype(wd))
    wout_t = jnp.zeros((Hp, Op), wd).at[:H, :O].set(w_out.T.astype(wd))
    bh_fold = jnp.zeros((1, Hp), f32).at[:, :H].set((b_xh + b_hh).astype(f32))
    bout = jnp.zeros((1, Op), f32).at[:, :O].set(b_out.astype(f32))

    # Pad x all the way to (Sp, Bp, I) up front so no pad/slice HBM copies sit
    # between the two pallas_calls.
    xp = jnp.zeros((Sp, Bp, I), f32).at[:S, :B, :].set(x.astype(f32))

    # 1) Input projection hoisted out of the recurrence: one big tiled GEMM.
    xw = _pallas_linear(xp.reshape(Sp * Bp, I), wxh_t, bh_fold)
    xw = xw.reshape(Sp, Bp, Hp)

    # 2) Recurrence + fused output projection.
    kernel = _make_rnn_kernel(t_blk, S, wd)
    wb = jnp.dtype(wd).itemsize
    need = (2 * t_blk * b_tile * Hp * 4            # xw blocks (double-buffered)
            + 2 * t_blk * b_tile * Op * 4          # out blocks
            + 2 * Hp * Hp * wb                     # W_hh^T
            + 2 * Hp * Op * wb + 2 * Op * 4        # W_out^T, b_out
            + 2 * b_tile * Hp * 4                  # hfinal
            + (b_tile * Hp + t_blk * b_tile * Hp) * 4)   # scratch
    vmem_limit = int(min(max(2 * need, 32 << 20), 64 << 20))

    out_p, hfinal = pl.pallas_call(
        kernel,
        out_shape=(jax.ShapeDtypeStruct((Sp, Bp, Op), f32),
                   jax.ShapeDtypeStruct((Bp, Hp), f32)),
        grid_spec=pltpu.PrefetchScalarGridSpec(
            num_scalar_prefetch=0,
            grid=(Bp // b_tile, Sp // t_blk),
            in_specs=[
                pl.BlockSpec((t_blk, b_tile, Hp), lambda b, t: (t, b, 0)),  # xW
                pl.BlockSpec((Hp, Hp), lambda b, t: (0, 0)),                # W_hh^T
                pl.BlockSpec((Hp, Op), lambda b, t: (0, 0)),                # W_out^T
                pl.BlockSpec((1, Op), lambda b, t: (0, 0)),                 # b_out
            ],
            out_specs=[
                pl.BlockSpec((t_blk, b_tile, Op), lambda b, t: (t, b, 0)),  # out
                pl.BlockSpec((b_tile, Hp), lambda b, t: (b, 0)),            # final h
            ],
            scratch_shapes=[pltpu.VMEM((b_tile, Hp), f32),
                            pltpu.VMEM((t_blk, b_tile, Hp), f32)],
        ),
        compiler_params=pltpu.CompilerParams(
            dimension_semantics=("parallel", "arbitrary"),
            vmem_limit_bytes=vmem_limit),
        # TODO(synk): single-buffer the loop-invariant weight specs
        # (pipeline_mode=pl.Buffered(1)) once Hp is large enough that a
        # double-buffered W_hh matters against v7x's 64 MiB VMEM.
    )(xw, whh_t, wout_t, bout)

    return out_p[:S, :B, :O], hfinal[:B, :H]


def minimal_rnn_reference(x, w_xh, b_xh, w_hh, b_hh, w_out, b_out):
    S, B, _ = x.shape
    H = w_hh.shape[0]
    hp = lax.Precision.HIGHEST
    h = jnp.zeros((B, H), jnp.float32)
    outs = []
    for t in range(S):
        h = jnp.tanh(jnp.dot(x[t], w_xh.T, precision=hp) + b_xh
                     + jnp.dot(h, w_hh.T, precision=hp) + b_hh)
        outs.append(jnp.dot(h, w_out.T, precision=hp) + b_out)
    return jnp.stack(outs, axis=0), h


if __name__ == "__main__":
    # Shapes implied by the forward: x is (seq_len, batch, input_size).
    seq_len, batch, input_size, hidden_size, output_size = 8, 2, 4, 32, 4

    key = jax.random.PRNGKey(0)
    ks = jax.random.split(key, 7)
    x = jax.random.normal(ks[0], (seq_len, batch, input_size), jnp.float32)

    # nn.Linear layout: weight (out, in), bias (out,).
    w_xh = 0.1 * jax.random.normal(ks[1], (hidden_size, input_size), jnp.float32)
    b_xh = 0.1 * jax.random.normal(ks[2], (hidden_size,), jnp.float32)
    w_hh = 0.1 * jax.random.normal(ks[3], (hidden_size, hidden_size), jnp.float32)
    b_hh = 0.1 * jax.random.normal(ks[4], (hidden_size,), jnp.float32)
    w_out = 0.1 * jax.random.normal(ks[5], (output_size, hidden_size), jnp.float32)
    b_out = 0.1 * jax.random.normal(ks[6], (output_size,), jnp.float32)

    ref_out, ref_h = minimal_rnn_reference(x, w_xh, b_xh, w_hh, b_hh, w_out, b_out)

    # f32 weights: reference-exact path.
    outputs, hidden = minimal_rnn_forward(x, w_xh, b_xh, w_hh, b_hh, w_out, b_out,
                                          t_blk=32)
    jax.block_until_ready((outputs, hidden))
    assert outputs.shape == (seq_len, batch, output_size)
    assert hidden.shape == (batch, hidden_size)
    assert jnp.allclose(outputs, ref_out, atol=2e-5, rtol=2e-5)
    assert jnp.allclose(hidden, ref_h, atol=2e-5, rtol=2e-5)

    # bf16 weights (recommended on v6e/v7x): ~2x MXU throughput, half the
    # weight VMEM/HBM traffic; f32 accumulation, looser tolerance.
    outputs_bf, hidden_bf = minimal_rnn_forward(
        x, w_xh, b_xh, w_hh, b_hh, w_out, b_out,
        t_blk=32, param_dtype=jnp.bfloat16)
    jax.block_until_ready((outputs_bf, hidden_bf))
    assert jnp.allclose(outputs_bf, ref_out, atol=5e-2, rtol=0.0)
    assert jnp.allclose(hidden_bf, ref_h, atol=5e-2, rtol=0.0)

    print("KERNEL_OK")
</pallas_src>

<mosaic_0001>
module attributes {stable_mosaic.version = 11 : i64} {
  func.func @_linear_kernel(%arg0: i32, %arg1: memref<64x4xf32, #tpu.memory_space<vmem>>, %arg2: memref<4x128xf32, #tpu.memory_space<vmem>>, %arg3: memref<1x128xf32, #tpu.memory_space<vmem>>, %arg4: memref<64x128xf32, #tpu.memory_space<vmem>>) attributes {dimension_semantics = [#tpu.dimension_semantics<parallel>], iteration_bounds = array<i64: 1>, scalar_prefetch = 0 : i64, scratch_operands = 0 : i64, tpu.core_type = #tpu.core_type<tc>, window_params = [{transform_indices = @transform_0, window_bounds = array<i64: 64, 4>}, {pipeline_mode = #tpu.pipeline_mode<synchronous>, transform_indices = @transform_1, window_bounds = array<i64: 4, 128>}, {pipeline_mode = #tpu.pipeline_mode<synchronous>, transform_indices = @transform_2, window_bounds = array<i64: 1, 128>}, {transform_indices = @transform_3, window_bounds = array<i64: 64, 128>}]} {
    %c0 = arith.constant 0 : index
    %c0_0 = arith.constant 0 : index
    %0 = vector.load %arg1[%c0, %c0_0] : memref<64x4xf32, #tpu.memory_space<vmem>>, vector<64x4xf32>
    %c0_1 = arith.constant 0 : index
    %c0_2 = arith.constant 0 : index
    %1 = vector.load %arg2[%c0_1, %c0_2] : memref<4x128xf32, #tpu.memory_space<vmem>>, vector<4x128xf32>
    %cst = arith.constant dense<0.000000e+00> : vector<64x128xf32>
    %2 = tpu.matmul %0, %1, %cst {dimension_numbers = #tpu.dot_dimension_numbers<[1], [0], [0], [1], [0, 0, 1, 1], [], []>} : vector<64x4xf32>, vector<4x128xf32>, vector<64x128xf32> -> vector<64x128xf32>
    %c0_3 = arith.constant 0 : index
    %c0_4 = arith.constant 0 : index
    %3 = vector.load %arg3[%c0_3, %c0_4] : memref<1x128xf32, #tpu.memory_space<vmem>>, vector<1x128xf32>
    %4 = vector.broadcast %3 : vector<1x128xf32> to vector<64x128xf32>
    %5 = arith.addf %2, %4 : vector<64x128xf32>
    %c0_5 = arith.constant 0 : index
    %c0_6 = arith.constant 0 : index
    %6 = vector.load %arg4[%c0_5, %c0_6] : memref<64x128xf32, #tpu.memory_space<vmem>>, vector<64x128xf32>
    tpu.vector_store %arg4[%c0_5, %c0_6], %5 {strides = array<i32>} : memref<64x128xf32, #tpu.memory_space<vmem>>, vector<64x128xf32>,
    return
  }
  func.func @transform_0(%arg0: i32) -> (i32, i32) {
    %c0_i32 = arith.constant 0 : i32
    %c0_i32_0 = arith.constant 0 : i32
    return %arg0, %c0_i32 : i32, i32
  }
  func.func @transform_1(%arg0: i32) -> (i32, i32) {
    %c0_i32 = arith.constant 0 : i32
    %c0_i32_0 = arith.constant 0 : i32
    %c0_i32_1 = arith.constant 0 : i32
    return %c0_i32, %c0_i32_0 : i32, i32
  }
  func.func @transform_2(%arg0: i32) -> (i32, i32) {
    %c0_i32 = arith.constant 0 : i32
    %c0_i32_0 = arith.constant 0 : i32
    %c0_i32_1 = arith.constant 0 : i32
    return %c0_i32, %c0_i32_0 : i32, i32
  }
  func.func @transform_3(%arg0: i32) -> (i32, i32) {
    %c0_i32 = arith.constant 0 : i32
    %c0_i32_0 = arith.constant 0 : i32
    return %arg0, %c0_i32 : i32, i32
  }
}

</mosaic_0001>

<bundles_post_ra>
// kernel: tpu_custom_call.1
= control target key start
LH: loop header
LB: loop body
LE: loop exit
PB: predicated region body
PF: predicated region fallthrough
CT: control target
= control target key end

     0   :  { %vm56_vm0 = vcmask 1043456   ;;  %vm31_vm1 = vcmask 31744   ;;  %s324_s0 = inlined_call_operand.vmem [shape: f32[64,4], index: 0, kind: input, shape index: {}]   ;;  %s325_s1 = inlined_call_operand.vmem [shape: f32[4,128], index: 1, kind: input, shape index: {}]   ;;  %s326_s2 = inlined_call_operand.vmem [shape: f32[1,128], index: 2, kind: input, shape index: {}]   ;;  %s327_s3 = inlined_call_operand.hbm [shape: f32[64,128], index: 3, kind: output, shape index: {}]  }
   0x1   :  { %v23_v0 = vld [vmem:[%s325_s1] sm:$0xf]  ;;  %v16_v3 = vld [vmem:[%s324_s0 + $0x8] sm:$0xff]  ;;  %v17_v5 = vld [vmem:[%s324_s0 + $0x10] sm:$0xff] }
   0x2   :  { %v15_v1 = vld [vmem:[%s324_s0] sm:$0xff]  ;;  %208 = vmatprep.subr.msk.mxu0 %vm56_vm0, %v23_v0  ;;  %222 = vmatprep.subr.msk.mxu1 %vm56_vm0, %v23_v0  ;;  %v20_v4 = vld [vmem:[%s324_s0 + $0x28] sm:$0xff]  ;;  %v21_v6 = vld [vmem:[%s324_s0 + $0x30] sm:$0xff] }
   0x3   :  { %v19_v2 = vld [vmem:[%s324_s0 + $0x20] sm:$0xff]  ;;  %209 = vmatpush3.msk.msra.mxu0 %vm56_vm0, %v23_v0  ;;  %223 = vmatpush3.msk.msra.mxu1 %vm56_vm0, %v23_v0 }
   0x4   :  { %210 = vmatprep.mubr.msk.f32.mxu0 %vm31_vm1, %v15_v1  ;;  %216 = vmatprep.mubr.msk.f32.mxu1 %vm31_vm1, %v19_v2 }
   0x5   :  { %8 = vsyncpa [#allocation3], 0  ;;  %211 = vmatmul.mubr.msk.f32.vlgmr.msra.gmra.mrb[0].mxu0 %vm31_vm1, %v16_v3  ;;  %217 = vmatmul.mubr.msk.f32.vlgmr.msra.gmra.mrb[0].mxu1 %vm31_vm1, %v20_v4  ;;  %v18_v7 = vld [vmem:[%s324_s0 + $0x18] sm:$0xff]  ;;  %v189_v9 = vld [vmem:[%s326_s2] ss:$0 sm:$0xff]  ;;  %s251_s4 = smov [#allocation2]  }
   0x6   :  { %213 = vmatprep.mubr.msk.f32.mxu0 %vm31_vm1, %v17_v5  ;;  %219 = vmatprep.mubr.msk.f32.mxu1 %vm31_vm1, %v21_v6  ;;  %v22_v8 = vld [vmem:[%s324_s0 + $0x38] sm:$0xff]  ;;  %s178_s5 = sshll.u32 %s251_s4, 4  ;;  %s179_s5 = int_to_ptr.vmem [resolvable:$true] %s178_s5 }
   0x7   :  { %s227_s0 = scalar_lea.vmem %s179_s5, 1024  ;;  %p232_p1 = scmp.lt.s32.totalorder %s179_s5, %s179_s5 }
   0x8   :  { %p228_p0 = scmp.ne.s32.totalorder %s179_s5, %s227_s0  ;;  %p233_p2 = scmp.lt.s32.totalorder %s227_s0, %s227_s0 }
   0x9   :  { %214 = vmatmul.mubr.msk.f32.gmra.mrb[2].mxu0 %vm31_vm1, %v18_v7  ;;  %220 = vmatmul.mubr.msk.f32.gmra.mrb[2].mxu1 %vm31_vm1, %v22_v8 }
   0xa   :  { %p234_p3 = por %p233_p2, %p232_p1 }
   0xc   :  { %p235_p4 = pnand %p234_p3, %p228_p0 }
  0xd8   :  { %v212_v10 = vpop.f32.mrb[0].mxu0  ;;  %v218_v11 = vpop.f32.mrb[0].mxu1 }
  0xd9   :  { %v132_v12 = vadd.f32 %v212_v10, %v189_v9  ;;  %v152_v13 = vadd.f32 %v218_v11, %v189_v9  ;;  %v126_v14 = vpop.f32.mrb[1].mxu0  ;;  %v146_v15 = vpop.f32.mrb[1].mxu1 }
  0xda   :  { %v127_v16 = vadd.f32 %v189_v9, %v126_v14  ;;  %v147_v17 = vadd.f32 %v189_v9, %v146_v15 }
  0xdb   :  { %166 = vst [vmem:[#allocation2 + $0x8] sm:$0xff] %v132_v12  ;;  %170 = vst [vmem:[#allocation2 + $0x28] sm:$0xff] %v152_v13 }
  0xdc   :  { %165 = vst [vmem:[#allocation2] sm:$0xff] %v127_v16  ;;  %169 = vst [vmem:[#allocation2 + $0x20] sm:$0xff] %v147_v17  ;;  %v215_v18 = vpop.f32.mrb[2].mxu0  ;;  %v221_v19 = vpop.f32.mrb[2].mxu1 }
  0xdd   :  { %v142_v20 = vadd.f32 %v215_v18, %v189_v9  ;;  %v162_v21 = vadd.f32 %v221_v19, %v189_v9  ;;  %v136_v22 = vpop.f32.mrb[3].mxu0  ;;  %v156_v23 = vpop.f32.mrb[3].mxu1 }
  0xde   :  { %v137_v24 = vadd.f32 %v189_v9, %v136_v22  ;;  %v157_v25 = vadd.f32 %v189_v9, %v156_v23 }
  0xdf   :  { %168 = vst [vmem:[#allocation2 + $0x18] sm:$0xff] %v142_v20  ;;  %172 = vst [vmem:[#allocation2 + $0x38] sm:$0xff] %v162_v21 }
  0xe0   :  { %167 = vst [vmem:[#allocation2 + $0x10] sm:$0xff] %v137_v24  ;;  %171 = vst [vmem:[#allocation2 + $0x30] sm:$0xff] %v157_v25 }
  0xe1   :  { %238 = shalt.err (!%p235_p4)
}
  0xe2   :  { %s239_s7 = scalar_lea.hbm %s327_s3, 1024 }
  0xe3   :  { %p240_p5 = scmp.ne.s32.totalorder %s327_s3, %s239_s7  ;;  %p243_p6 = scmp.lt.u32.totalorder %s239_s7, %s327_s3 }
  0xe5   :  { %p245_p7 = pnand %p243_p6, %p240_p5 }
  0xe7   :  { %248 = shalt.err (!%p245_p7)
}
  0xe8   :  { %s252_s12 = smov 128   ;;  %s253_s13 = smov 8  }
  0xe9   :  { %184 = dma.vmem_to_hbm [thread:$0]  %s179_s5, 1024, %s327_s3, [#allocation3], %s252_s12, %s252_s12, %s253_s13  }
  0xea   :  { %249 = dma.done.wait [#allocation3], 1024  }
  0xeb   :  { %250 = vsyncadd [#allocation3], 4294966272 }
  0xec   :  { %188 = vsyncpa [#allocation3], 1 }

</bundles_post_ra>
